<compile_context>
chip_gen: v7x
topology: tpu7x:2x2x1
jax: 0.10.0
libtpu: 0.0.40
codegen_flags: <defaults>
</compile_context>

<pallas_src>
import jax
import jax.numpy as jnp
from jax.experimental import pallas as pl
from jax.experimental.pallas import tpu as pltpu


def _subspace_kernel(z_ref, u_ref, l_ref, mu_ref, o_ref):
    # z_ref : (tm, n_basis)   VMEM tile of latent codes (batch tile)
    # u_ref : (n_basis, tn)   column slab of the basis matrix (resident per slab)
    # l_ref : (1, n_basis)    per-basis scales (resident)
    # mu_ref: (1, tn)         mean-offset slab (resident per slab)
    # o_ref : (tm, tn)        output tile
    scaled = z_ref[...] * l_ref[...]              # VPU broadcast over rows
    acc = jnp.dot(scaled, u_ref[...],             # MXU matmul, f32 accumulate
                  preferred_element_type=jnp.float32)
    o_ref[...] = (acc + mu_ref[...]).astype(o_ref.dtype)


def _round_up(x, m):
    return ((x + m - 1) // m) * m


def _vmem_budgets():
    """Per-generation (tile_budget_bytes, vmem_limit_bytes).

    Conservative v7x numbers (64 MiB physical VMEM) unless the hardware query
    reports a 128-MiB-class chip (v5e/v6e)."""
    tile_budget = 40 * 1024 * 1024
    vmem_limit = 52 * 1024 * 1024
    try:
        cap = pltpu.get_tpu_info().vmem_capacity_bytes
        if cap >= 128 * 1024 * 1024:
            tile_budget = 64 * 1024 * 1024
            vmem_limit = 96 * 1024 * 1024
    except Exception:
        pass  # keep the conservative (v7x-safe) defaults
    return tile_budget, vmem_limit


def _pick_tiles(B, n_basis, dim, z_itemsize, p_itemsize, o_itemsize,
                budget_bytes):
    """Pick (tm, tn) tile sizes: lane-dense output stores, VMEM-budget aware,
    and at least 2 grid tiles whenever the problem is big enough to split."""
    big = budget_bytes >= 64 * 1024 * 1024
    tm_cap = 2048 if big else 1024          # batch-tile ceiling (multiple of 8)
    tn_cap = 4096 if big else 2048          # dim-tile ceiling (multiple of 128)

    tn = dim if dim <= tn_cap else tn_cap
    tm = B if B <= tm_cap else tm_cap

    def tile_bytes(tm_, tn_):
        return (2 * tm_ * n_basis * z_itemsize      # z, double-buffered
                + 2 * n_basis * tn_ * p_itemsize    # U (pipeline allocates 2 bufs)
                + 2 * n_basis * p_itemsize          # L
                + 2 * tn_ * p_itemsize              # mu
                + 2 * tm_ * tn_ * o_itemsize)       # output, double-buffered

    # Shrink the batch tile first (keeps lane-dense output), then dim.
    while tile_bytes(tm, tn) > budget_bytes and tm != B and tm > 8:
        tm = max(8, tm // 2)
    while tile_bytes(tm, tn) > budget_bytes and tn != dim and tn > 128:
        tn = max(128, tn // 2)

    # Guarantee >= 2 grid tiles so v7x's second TensorCore has work and the
    # pipeline can overlap inbound DMA with output writeback.  Prefer
    # splitting the dim axis (keeps big batch tiles); fall back to batch.
    if pl.cdiv(B, tm) * pl.cdiv(dim, tn) < 2:
        if dim >= 256:
            tn = max(128, _round_up(pl.cdiv(dim, 2), 128))
        elif B >= 16:
            tm = max(8, _round_up(pl.cdiv(B, 2), 8))
        # else: problem too tiny to split — keep the (1,1) grid.
    return tm, tn


def subspace_layer(z, U, L, mu):
    """Pallas implementation of  (L * z) @ U + mu."""
    B, n_basis = z.shape
    n_basis_u, dim = U.shape
    assert n_basis_u == n_basis
    L2 = L.reshape(1, n_basis)
    mu2 = mu.reshape(1, dim)

    out_dtype = z.dtype
    z_it = jnp.dtype(z.dtype).itemsize
    p_it = jnp.dtype(U.dtype).itemsize
    o_it = jnp.dtype(out_dtype).itemsize

    tile_budget, vmem_limit = _vmem_budgets()
    tm, tn = _pick_tiles(B, n_basis, dim, z_it, p_it, o_it, tile_budget)

    gn = pl.cdiv(dim, tn)   # dim slabs  — OUTER grid axis
    gm = pl.cdiv(B, tm)     # batch tiles — INNER grid axis (U/mu stay resident)
    grid = (gn, gm)

    cost = pl.CostEstimate(
        flops=2 * B * n_basis * dim + B * dim,
        transcendentals=0,
        bytes_accessed=(z_it * B * n_basis * gn          # z re-read per dim slab
                        + p_it * n_basis * dim           # U fetched once
                        + jnp.dtype(L.dtype).itemsize * n_basis * gn
                        + jnp.dtype(mu.dtype).itemsize * dim
                        + o_it * B * dim),               # output written once
    )

    return pl.pallas_call(
        _subspace_kernel,
        out_shape=jax.ShapeDtypeStruct((B, dim), out_dtype),
        grid_spec=pltpu.PrefetchScalarGridSpec(
            num_scalar_prefetch=0,
            grid=grid,
            in_specs=[
                # index_map args: (j = dim-slab idx, i = batch-tile idx)
                pl.BlockSpec((tm, n_basis), lambda j, i: (i, 0)),   # z batch tile
                pl.BlockSpec((n_basis, tn), lambda j, i: (0, j)),   # U column slab
                pl.BlockSpec((1, n_basis), lambda j, i: (0, 0)),    # L row
                pl.BlockSpec((1, tn), lambda j, i: (0, j)),         # mu slab
            ],
            out_specs=pl.BlockSpec((tm, tn), lambda j, i: (i, j)),
        ),
        compiler_params=pltpu.CompilerParams(
            dimension_semantics=("parallel", "parallel"),
            vmem_limit_bytes=vmem_limit,
        ),
        cost_estimate=cost,
    )(z, U, L2, mu2)


def init_subspace_params(key, dim, n_basis, dtype=jnp.float32):
    """Deterministic init matching the PyTorch module's __init__ shapes.
    U: orthogonal (n_basis, dim) via QR; L = [3*n_basis, ..., 3]; mu = zeros."""
    g = jax.random.normal(key, (dim, n_basis), dtype=jnp.float32)
    q, _ = jnp.linalg.qr(g)                      # (dim, n_basis), orthonormal columns
    U = q.T.astype(dtype)                        # (n_basis, dim), orthonormal rows
    L = jnp.array([3.0 * i for i in range(n_basis, 0, -1)], dtype=dtype)
    mu = jnp.zeros((dim,), dtype=dtype)
    return U, L, mu


if __name__ == "__main__":
    key = jax.random.PRNGKey(0)
    k_z, k_u, k_z2, k_u2 = jax.random.split(key, 4)

    # Small, module-consistent shapes (too tiny to split -> (1,1) grid path).
    batch, n_basis, dim = 8, 16, 128
    z = jax.random.normal(k_z, (batch, n_basis), dtype=jnp.float32)
    U, L, mu = init_subspace_params(k_u, dim, n_basis)
    out = jax.block_until_ready(subspace_layer(z, U, L, mu))
    ref = (L * z) @ U + mu
    assert out.shape == (batch, dim)
    assert jnp.allclose(out, ref, atol=2e-4, rtol=1e-5)

    # Slightly larger shape exercises the >=2-tile dim split (grid=(2,1))
    # and a partial edge tile on the dim axis.
    batch2, n_basis2, dim2 = 24, 16, 384
    z2 = jax.random.normal(k_z2, (batch2, n_basis2), dtype=jnp.float32)
    U2, L2v, mu2v = init_subspace_params(k_u2, dim2, n_basis2)
    out2 = jax.block_until_ready(subspace_layer(z2, U2, L2v, mu2v))
    ref2 = (L2v * z2) @ U2 + mu2v
    assert out2.shape == (batch2, dim2)
    assert jnp.allclose(out2, ref2, atol=2e-4, rtol=1e-5)

    print("KERNEL_OK")
</pallas_src>

<mosaic_0001>
module attributes {stable_mosaic.version = 11 : i64} {
  func.func @_subspace_kernel(%arg0: i32, %arg1: i32, %arg2: memref<8x16xf32, #tpu.memory_space<vmem>>, %arg3: memref<16x128xf32, #tpu.memory_space<vmem>>, %arg4: memref<1x16xf32, #tpu.memory_space<vmem>>, %arg5: memref<1x128xf32, #tpu.memory_space<vmem>>, %arg6: memref<8x128xf32, #tpu.memory_space<vmem>>) attributes {dimension_semantics = [#tpu.dimension_semantics<parallel>, #tpu.dimension_semantics<parallel>], iteration_bounds = array<i64: 1, 1>, scalar_prefetch = 0 : i64, scratch_operands = 0 : i64, tpu.core_type = #tpu.core_type<tc>, window_params = [{transform_indices = @transform_0, window_bounds = array<i64: 8, 16>}, {transform_indices = @transform_1, window_bounds = array<i64: 16, 128>}, {pipeline_mode = #tpu.pipeline_mode<synchronous>, transform_indices = @transform_2, window_bounds = array<i64: 1, 16>}, {transform_indices = @transform_3, window_bounds = array<i64: 1, 128>}, {transform_indices = @transform_4, window_bounds = array<i64: 8, 128>}]} {
    %c0 = arith.constant 0 : index
    %c0_0 = arith.constant 0 : index
    %0 = vector.load %arg2[%c0, %c0_0] : memref<8x16xf32, #tpu.memory_space<vmem>>, vector<8x16xf32>
    %c0_1 = arith.constant 0 : index
    %c0_2 = arith.constant 0 : index
    %1 = vector.load %arg4[%c0_1, %c0_2] : memref<1x16xf32, #tpu.memory_space<vmem>>, vector<1x16xf32>
    %2 = vector.broadcast %1 : vector<1x16xf32> to vector<8x16xf32>
    %3 = arith.mulf %0, %2 : vector<8x16xf32>
    %c0_3 = arith.constant 0 : index
    %c0_4 = arith.constant 0 : index
    %4 = vector.load %arg3[%c0_3, %c0_4] : memref<16x128xf32, #tpu.memory_space<vmem>>, vector<16x128xf32>
    %cst = arith.constant dense<0.000000e+00> : vector<8x128xf32>
    %5 = tpu.matmul %3, %4, %cst {dimension_numbers = #tpu.dot_dimension_numbers<[1], [0], [0], [1], [0, 0, 1, 1], [], []>} : vector<8x16xf32>, vector<16x128xf32>, vector<8x128xf32> -> vector<8x128xf32>
    %c0_5 = arith.constant 0 : index
    %c0_6 = arith.constant 0 : index
    %6 = vector.load %arg5[%c0_5, %c0_6] : memref<1x128xf32, #tpu.memory_space<vmem>>, vector<1x128xf32>
    %7 = vector.broadcast %6 : vector<1x128xf32> to vector<8x128xf32>
    %8 = arith.addf %5, %7 : vector<8x128xf32>
    %c0_7 = arith.constant 0 : index
    %c0_8 = arith.constant 0 : index
    %9 = vector.load %arg6[%c0_7, %c0_8] : memref<8x128xf32, #tpu.memory_space<vmem>>, vector<8x128xf32>
    tpu.vector_store %arg6[%c0_7, %c0_8], %8 {strides = array<i32>} : memref<8x128xf32, #tpu.memory_space<vmem>>, vector<8x128xf32>,
    return
  }
  func.func @transform_0(%arg0: i32, %arg1: i32) -> (i32, i32) {
    %c0_i32 = arith.constant 0 : i32
    %c0_i32_0 = arith.constant 0 : i32
    return %arg1, %c0_i32 : i32, i32
  }
  func.func @transform_1(%arg0: i32, %arg1: i32) -> (i32, i32) {
    %c0_i32 = arith.constant 0 : i32
    %c0_i32_0 = arith.constant 0 : i32
    return %c0_i32, %arg0 : i32, i32
  }
  func.func @transform_2(%arg0: i32, %arg1: i32) -> (i32, i32) {
    %c0_i32 = arith.constant 0 : i32
    %c0_i32_0 = arith.constant 0 : i32
    %c0_i32_1 = arith.constant 0 : i32
    return %c0_i32, %c0_i32_0 : i32, i32
  }
  func.func @transform_3(%arg0: i32, %arg1: i32) -> (i32, i32) {
    %c0_i32 = arith.constant 0 : i32
    %c0_i32_0 = arith.constant 0 : i32
    return %c0_i32, %arg0 : i32, i32
  }
  func.func @transform_4(%arg0: i32, %arg1: i32) -> (i32, i32) {
    %c0_i32 = arith.constant 0 : i32
    return %arg1, %arg0 : i32, i32
  }
}

</mosaic_0001>

<bundles_post_ra>
// kernel: tpu_custom_call.1
= control target key start
LH: loop header
LB: loop body
LE: loop exit
PB: predicated region body
PF: predicated region fallthrough
CT: control target
= control target key end

     0   :  { %9 = vsyncpa [#allocation3], 0  ;;  %s331_s0 = inlined_call_operand.hbm [shape: f32[8,16], index: 0, kind: input, shape index: {}]   ;;  %s332_s1 = inlined_call_operand.hbm [shape: f32[16,128], index: 1, kind: input, shape index: {}]   ;;  %s333_s2 = inlined_call_operand.vmem [shape: f32[1,16], index: 2, kind: input, shape index: {}]   ;;  %s334_s3 = inlined_call_operand.vmem [shape: f32[1,128], index: 3, kind: input, shape index: {}]   ;;  %s335_s4 = inlined_call_operand.hbm [shape: f32[8,128], index: 4, kind: output, shape index: {}]  }
   0x1   :  { %10 = vsyncpa [#allocation6], 0 }
   0x2   :  { %11 = vsyncpa [#allocation4], 0  ;;  %s249_s15 = smov [#allocation2]   ;;  %s250_s17 = smov [#allocation5]  }
   0x3   :  { %s18_s16 = sshll.u32 %s249_s15, 4  ;;  %s27_s18 = sshll.u32 %s250_s17, 4  ;;  %s19_s16 = int_to_ptr.vmem [resolvable:$true] %s18_s16  ;;  %s282_s18 = int_to_ptr.vmem [resolvable:$true] %s27_s18 }
   0x4   :  { %s177_s21 = scalar_lea.hbm %s331_s0, 128 }
   0x5   :  { %p178_p0 = scmp.ne.s32.totalorder %s331_s0, %s177_s21  ;;  %p181_p1 = scmp.lt.u32.totalorder %s177_s21, %s331_s0 }
   0x7   :  { %p183_p2 = pnand %p181_p1, %p178_p0 }
   0x9   :  { %186 = shalt.err (!%p183_p2)
}
   0xa   :  { %s187_s26 = scalar_lea.vmem %s19_s16, 128  ;;  %p192_p4 = scmp.lt.s32.totalorder %s19_s16, %s19_s16 }
   0xb   :  { %p188_p3 = scmp.ne.s32.totalorder %s19_s16, %s187_s26  ;;  %p193_p5 = scmp.lt.s32.totalorder %s187_s26, %s187_s26 }
   0xd   :  { %p194_p6 = por %p193_p5, %p192_p4 }
   0xf   :  { %p195_p7 = pnand %p194_p6, %p188_p3 }
  0x11   :  { %198 = shalt.err (!%p195_p7)
}
  0x12   :  { %21 = dma.hbm_to_vmem [thread:$0]  %s331_s0, 128, %s19_s16, [#allocation3]  }
  0x13   :  { %s199_s5 = scalar_lea.hbm %s332_s1, 256 }
  0x14   :  { %p200_p8 = scmp.ne.s32.totalorder %s332_s1, %s199_s5  ;;  %p203_p9 = scmp.lt.u32.totalorder %s199_s5, %s332_s1 }
  0x16   :  { %p205_p10 = pnand %p203_p9, %p200_p8 }
  0x18   :  { %208 = shalt.err (!%p205_p10)
}
  0x19   :  { %s209_s10 = scalar_lea.vmem %s282_s18, 256  ;;  %p214_p12 = scmp.lt.s32.totalorder %s282_s18, %s282_s18 }
  0x1a   :  { %p210_p11 = scmp.ne.s32.totalorder %s282_s18, %s209_s10  ;;  %p215_p13 = scmp.lt.s32.totalorder %s209_s10, %s209_s10 }
  0x1c   :  { %p216_p0 = por %p215_p13, %p214_p12 }
  0x1e   :  { %p217_p1 = pnand %p216_p0, %p210_p11 }
  0x20   :  { %220 = shalt.err (!%p217_p1)
}
  0x21   :  { %s251_s0 = smov 128   ;;  %s252_s11 = smov 8  }
  0x22   :  { %33 = dma.hbm_to_vmem [thread:$0]  %s332_s1, 256, %s282_s18, [#allocation6], %s251_s0, %s251_s0, %s252_s11  }
  0x23   :  { %243 = dma.done.wait [#allocation3], 128  }
  0x24   :  { %244 = vsyncadd [#allocation3], 4294967168 }
  0x25   :  { %245 = dma.done.wait [#allocation6], 256  }
  0x26   :  { %246 = vsyncadd [#allocation6], 4294967040  ;;  %v253_v0 = vmov 0.0|0.0   ;;  %vm254_vm0 = vmmov 0   ;;  %v255_v1 = vmov 0.0   ;;  %v53_v2 = vld [vmem:[#allocation5] sm:$0xff] }
  0x27   :  { %166 = vmatprep.subr.bf16.mxu0 %v253_v0  ;;  %163 = vmatprep.mubr.msk.f32.mxu0 %vm254_vm0, %v255_v1  ;;  %v54_v3 = vld [vmem:[#allocation5 + $0x8] sm:$0xff]  ;;  %v44_v4 = vld [vmem:[#allocation2] sm:$0xff]  ;;  %vm62_vm1 = vcmask 130048   ;;  %s256_s17 = smov [#allocation7]  }
  0x28   :  { %v167_v5 = vpack.c.bf16 %v54_v3, %v53_v2  ;;  %v153_v6 = vld [vmem:[%s333_s2] ss:$0 sm:$0xff]  ;;  %s143_s18 = sshll.u32 %s256_s17, 4  ;;  %s144_s18 = int_to_ptr.vmem [resolvable:$true] %s143_s18 }
  0x29   :  { %v52_v7 = vmul.f32 %v153_v6, %v44_v4  ;;  %v154_v8 = vld [vmem:[%s334_s3] ss:$0 sm:$0xff]  ;;  %s221_s19 = scalar_lea.vmem %s144_s18, 128  ;;  %p226_p3 = scmp.lt.s32.totalorder %s144_s18, %s144_s18 }
  0x2a   :  { %168 = vmatpush3.bf16.msra.mxu0 %v167_v5  ;;  %p222_p2 = scmp.ne.s32.totalorder %s144_s18, %s221_s19  ;;  %p227_p4 = scmp.lt.s32.totalorder %s221_s19, %s221_s19 }
  0x2c   :  { %p228_p5 = por %p227_p4, %p226_p3 }
  0x2d   :  { %164 = vmatmul.mubr.msk.f32.vlgmr.msra.gmra.mrb[0].mxu0 %vm62_vm1, %v52_v7 }
  0x2e   :  { %p229_p6 = pnand %p228_p5, %p222_p2 }
 0x100   :  { %v132_v9 = vpop.f32.mrb[0].mxu0 }
 0x101   :  { %v133_v10 = vadd.f32 %v154_v8, %v132_v9  ;;  %v165_v11 = vpop.f32.mrb[1].mxu0 }
 0x103   :  { %136 = vst [vmem:[#allocation7] sm:$0xff] %v133_v10 }
 0x104   :  { %232 = shalt.err (!%p229_p6)
}
 0x105   :  { %s233_s21 = scalar_lea.hbm %s335_s4, 128 }
 0x106   :  { %p234_p7 = scmp.ne.s32.totalorder %s335_s4, %s233_s21  ;;  %p237_p8 = scmp.lt.u32.totalorder %s233_s21, %s335_s4 }
 0x108   :  { %p239_p9 = pnand %p237_p8, %p234_p7 }
 0x10a   :  { %242 = shalt.err (!%p239_p9)
}
 0x10b   :  { %146 = dma.vmem_to_hbm [thread:$0]  %s144_s18, 128, %s335_s4, [#allocation4]  }
 0x10c   :  { %247 = dma.done.wait [#allocation4], 128  }
 0x10d   :  { %248 = vsyncadd [#allocation4], 4294967168 }
 0x10e   :  { %150 = vsyncpa [#allocation3], 1 }
 0x10f   :  { %151 = vsyncpa [#allocation6], 1 }
 0x110   :  { %152 = vsyncpa [#allocation4], 1 }

</bundles_post_ra>
